<compile_context>
chip_gen: v7x
topology: tpu7x:2x2x1
jax: 0.10.0
libtpu: 0.0.40
codegen_flags: <defaults>
</compile_context>

<pallas_src>
import jax
import jax.numpy as jnp
from jax import lax
from jax.experimental import pallas as pl
from jax.experimental.pallas import tpu as pltpu


def make_candle_lstm_kernel(T, B, H, V, DV, DDV):
    """Fused embedding-projection + LSTM recurrence + FC + sigmoid kernel."""
    TB = T * B

    def kernel(idx_ref, scal_ref, pc_ref, pd_ref, pdd_ref, ws_ref, b_ref,
               whh_ref, fcw_ref, fcb_ref, out_ref):
        # idx_ref  : (T*B, 3) int32  time-major ids [candle, day, dd]
        # scal_ref : (T*B, 6) f32    time-major [vol, io, c_itm, c_otm, p_itm, p_otm]
        # pc_ref   : (V,   4H) f32   emb_candle @ W_ih[:, candle cols]^T
        # pd_ref   : (DV,  4H) f32   emb_day    @ W_ih[:, day cols]^T
        # pdd_ref  : (DDV, 4H) f32   emb_dd     @ W_ih[:, dd cols]^T
        # ws_ref   : (6,   4H) f32   scalar-channel rows of W_ih^T
        # b_ref    : (1,   4H) f32   b_ih + b_hh
        # whh_ref  : (H,   4H) f32   W_hh^T
        # fcw_ref  : (H,   O)  f32   fc.weight^T
        # fcb_ref  : (1,   O)  f32   fc.bias
        # out_ref  : (B,   O)

        # --- Fused "embedding gather + concat + input projection", all off the
        # serial chain.  Gathers are expressed as one-hot matmuls against the
        # pre-projected tables, so no in-kernel gather or lane-concat is needed
        # and the whole input projection for every timestep is 4 small MXU ops.
        idx = idx_ref[...]                                              # (T*B, 3)
        oc = (idx[:, 0:1] ==
              lax.broadcasted_iota(jnp.int32, (TB, V), 1)).astype(jnp.float32)
        od = (idx[:, 1:2] ==
              lax.broadcasted_iota(jnp.int32, (TB, DV), 1)).astype(jnp.float32)
        odd = (idx[:, 2:3] ==
               lax.broadcasted_iota(jnp.int32, (TB, DDV), 1)).astype(jnp.float32)

        xw = (jnp.dot(oc, pc_ref[...], preferred_element_type=jnp.float32)
              + jnp.dot(od, pd_ref[...], preferred_element_type=jnp.float32)
              + jnp.dot(odd, pdd_ref[...], preferred_element_type=jnp.float32)
              + jnp.dot(scal_ref[...], ws_ref[...],
                        preferred_element_type=jnp.float32)
              + b_ref[...])                                             # (T*B, 4H)

        # --- Recurrence: W_hh^T hoisted, h/c as loop-carried vregs, fully
        # unrolled static T so the LLO scheduler sees across steps.
        # Follow-up (needs bundle dump): stage W_hh^T weight-stationary on the
        # MXU (pltpu.matmul_push_rhs / matmul_acc_lhs / matmul_pop) if the RHS
        # is re-pushed per step, then revisit the roll-based gate layout.
        whh = whh_ref[...]                                              # (H, 4H)
        h = jnp.zeros((B, H), jnp.float32)
        c = jnp.zeros((B, H), jnp.float32)

        for t in range(T):
            gates = xw[t * B:(t + 1) * B, :] + jnp.dot(
                h, whh, preferred_element_type=jnp.float32)             # (B, 4H)

            # Whole-vreg activations (2 EUP passes), per-gate lane extraction.
            sig = jax.nn.sigmoid(gates)                                 # i | f | . | o
            tnh = jnp.tanh(gates)                                       # . | . | g | .
            i = sig[:, 0 * H:1 * H]
            f = sig[:, 1 * H:2 * H]
            g = tnh[:, 2 * H:3 * H]
            o = sig[:, 3 * H:4 * H]

            c = f * c + i * g
            h = o * jnp.tanh(c)

        # Final Linear + sigmoid on the last hidden state (O=1 -> single masked
        # lane store; negligible).
        logits = (jnp.dot(h, fcw_ref[...], preferred_element_type=jnp.float32)
                  + fcb_ref[...])
        out_ref[...] = jax.nn.sigmoid(logits).astype(out_ref.dtype)

    return kernel


def prepare_params(params):
    """One-time weight preprocessing.  Run OUTSIDE the jitted forward so none
    of this shows up as per-call HLO glue."""
    hp = lax.Precision.HIGHEST
    E = params["emb_candle"].shape[1]
    DE = params["emb_day"].shape[1]
    DDE = params["emb_dd"].shape[1]
    w_ih = params["w_ih"]                    # (4H, F), F = E + 1 + DE + DDE + 5

    vcol = E                                 # volume column
    d0, d1 = E + 1, E + 1 + DE               # day-embedding columns
    dd0, dd1 = d1, d1 + DDE                  # dd-embedding columns
    s0 = dd1                                 # io, c_itm, c_otm, p_itm, p_otm

    pc = jnp.dot(params["emb_candle"], w_ih[:, 0:E].T, precision=hp)
    pd = jnp.dot(params["emb_day"], w_ih[:, d0:d1].T, precision=hp)
    pdd = jnp.dot(params["emb_dd"], w_ih[:, dd0:dd1].T, precision=hp)
    ws = jnp.concatenate([w_ih[:, vcol:vcol + 1], w_ih[:, s0:]], axis=1).T

    return {
        "pc": pc.astype(jnp.float32),                       # (V,   4H)
        "pd": pd.astype(jnp.float32),                       # (DV,  4H)
        "pdd": pdd.astype(jnp.float32),                     # (DDV, 4H)
        "ws": ws.astype(jnp.float32),                       # (6,   4H)
        "bias": (params["b_ih"] + params["b_hh"])[None, :].astype(jnp.float32),
        "whh_t": params["w_hh"].T.astype(jnp.float32),      # (H, 4H)
        "fcw_t": params["fc_w"].T.astype(jnp.float32),      # (H, O)
        "fcb": params["fc_b"][None, :].astype(jnp.float32), # (1, O)
    }


def candle_lstm_forward(prep, x_candle, x_volume, x_day, x_dd, x_io,
                        x_c_itm, x_c_otm, x_p_itm, x_p_otm):
    B, T = x_candle.shape
    V = prep["pc"].shape[0]
    DV = prep["pd"].shape[0]
    DDV = prep["pdd"].shape[0]
    H = prep["whh_t"].shape[0]
    O = prep["fcw_t"].shape[1]

    # The only per-call glue: pack ids and scalar channels into two tiny
    # time-major slabs (row index = t*B + b).  Everything else is in-kernel.
    idx = jnp.stack([x_candle, x_day, x_dd], axis=-1).astype(jnp.int32)   # (B,T,3)
    idx2d = jnp.transpose(idx, (1, 0, 2)).reshape(T * B, 3)
    scal = jnp.stack([x_volume, x_io, x_c_itm, x_c_otm, x_p_itm, x_p_otm],
                     axis=-1).astype(jnp.float32)                         # (B,T,6)
    scal2d = jnp.transpose(scal, (1, 0, 2)).reshape(T * B, 6)

    vmem = pl.BlockSpec(memory_space=pltpu.MemorySpace.VMEM)
    # Gridless, single-core call: all operands are a few KiB and VMEM-resident.
    return pl.pallas_call(
        make_candle_lstm_kernel(T, B, H, V, DV, DDV),
        out_shape=jax.ShapeDtypeStruct((B, O), jnp.float32),
        in_specs=[vmem] * 10,
        out_specs=vmem,
    )(idx2d, scal2d, prep["pc"], prep["pd"], prep["pdd"], prep["ws"],
      prep["bias"], prep["whh_t"], prep["fcw_t"], prep["fcb"])


def candle_lstm_reference(params, x_candle, x_volume, x_day, x_dd, x_io,
                          x_c_itm, x_c_otm, x_p_itm, x_p_otm):
    """Pure-JAX reference mirroring nn.Embedding x3 + cat + nn.LSTM(batch_first)
    + fc + sigmoid, with precision=HIGHEST matmuls for a tight comparison."""
    hp = lax.Precision.HIGHEST
    e_c = params["emb_candle"][x_candle]
    e_d = params["emb_day"][x_day]
    e_dd = params["emb_dd"][x_dd]
    feats = jnp.concatenate(
        [e_c, x_volume[..., None], e_d, e_dd, x_io[..., None],
         x_c_itm[..., None], x_c_otm[..., None],
         x_p_itm[..., None], x_p_otm[..., None]], axis=-1).astype(jnp.float32)
    B, T, _ = feats.shape
    H = params["w_hh"].shape[1]
    wih_t = params["w_ih"].T
    whh_t = params["w_hh"].T
    bias = params["b_ih"] + params["b_hh"]
    h = jnp.zeros((B, H), jnp.float32)
    c = jnp.zeros((B, H), jnp.float32)
    for t in range(T):
        gates = (jnp.dot(feats[:, t, :], wih_t, precision=hp)
                 + jnp.dot(h, whh_t, precision=hp) + bias)
        i = jax.nn.sigmoid(gates[:, 0 * H:1 * H])
        f = jax.nn.sigmoid(gates[:, 1 * H:2 * H])
        g = jnp.tanh(gates[:, 2 * H:3 * H])
        o = jax.nn.sigmoid(gates[:, 3 * H:4 * H])
        c = f * c + i * g
        h = o * jnp.tanh(c)
    return jax.nn.sigmoid(jnp.dot(h, params["fc_w"].T, precision=hp)
                          + params["fc_b"])


def init_params(key, vocab_size, embedding_dim, day_vocab_size, day_embedding_dim,
                dd_vocab_size, dd_embedding_dim, hidden_dim, output_dim):
    # NOTE: forward() semantics -> 6 scalar channels (the torch __init__'s
    # extra "+1" is a bug in the reference; see module docstring).
    input_dim = embedding_dim + day_embedding_dim + dd_embedding_dim + 6
    ks = jax.random.split(key, 9)
    s = 1.0 / (hidden_dim ** 0.5)

    def unif(k, shape, scale):
        return jax.random.uniform(k, shape, jnp.float32, -scale, scale)

    return {
        # nn.Embedding default: N(0, 1)
        "emb_candle": jax.random.normal(ks[0], (vocab_size, embedding_dim), jnp.float32),
        "emb_day": jax.random.normal(ks[1], (day_vocab_size, day_embedding_dim), jnp.float32),
        "emb_dd": jax.random.normal(ks[2], (dd_vocab_size, dd_embedding_dim), jnp.float32),
        # nn.LSTM default: U(-1/sqrt(H), 1/sqrt(H))
        "w_ih": unif(ks[3], (4 * hidden_dim, input_dim), s),
        "w_hh": unif(ks[4], (4 * hidden_dim, hidden_dim), s),
        "b_ih": unif(ks[5], (4 * hidden_dim,), s),
        "b_hh": unif(ks[6], (4 * hidden_dim,), s),
        # nn.Linear default: U(-1/sqrt(H), 1/sqrt(H))
        "fc_w": unif(ks[7], (output_dim, hidden_dim), s),
        "fc_b": unif(ks[8], (output_dim,), s),
    }


if __name__ == "__main__":
    B, T = 8, 8
    vocab_size, embedding_dim = 16, 8
    day_vocab_size, day_embedding_dim = 7, 4
    dd_vocab_size, dd_embedding_dim = 10, 4
    hidden_dim, output_dim = 32, 1

    key = jax.random.PRNGKey(0)
    k_param, k_in = jax.random.split(key)
    params = init_params(k_param, vocab_size, embedding_dim,
                         day_vocab_size, day_embedding_dim,
                         dd_vocab_size, dd_embedding_dim,
                         hidden_dim, output_dim)
    prep = prepare_params(params)          # one-time, outside the jitted forward

    ks = jax.random.split(k_in, 9)
    x_candle = jax.random.randint(ks[0], (B, T), 0, vocab_size)
    x_volume = jax.random.uniform(ks[1], (B, T), jnp.float32)
    x_day = jax.random.randint(ks[2], (B, T), 0, day_vocab_size)
    x_dd = jax.random.randint(ks[3], (B, T), 0, dd_vocab_size)
    x_io = jax.random.uniform(ks[4], (B, T), jnp.float32)
    x_c_itm = jax.random.uniform(ks[5], (B, T), jnp.float32)
    x_c_otm = jax.random.uniform(ks[6], (B, T), jnp.float32)
    x_p_itm = jax.random.uniform(ks[7], (B, T), jnp.float32)
    x_p_otm = jax.random.uniform(ks[8], (B, T), jnp.float32)

    fwd = jax.jit(candle_lstm_forward)
    out = fwd(prep, x_candle, x_volume, x_day, x_dd, x_io,
              x_c_itm, x_c_otm, x_p_itm, x_p_otm)
    jax.block_until_ready(out)
    assert out.shape == (B, output_dim)

    ref = candle_lstm_reference(params, x_candle, x_volume, x_day, x_dd, x_io,
                                x_c_itm, x_c_otm, x_p_itm, x_p_otm)
    max_err = float(jnp.max(jnp.abs(out - ref)))
    # Tightened from 5e-3: all-f32 path should track the HIGHEST-precision
    # pure-JAX reference closely; this catches any accidental bf16 regression.
    assert max_err < 1e-4, f"mismatch vs pure-JAX reference: max abs err {max_err}"

    print("KERNEL_OK")
</pallas_src>

<mosaic_0001>
module attributes {stable_mosaic.version = 11 : i64} {
  func.func @kernel(%arg0: memref<64x3xi32, #tpu.memory_space<vmem>>, %arg1: memref<64x6xf32, #tpu.memory_space<vmem>>, %arg2: memref<16x128xf32, #tpu.memory_space<vmem>>, %arg3: memref<7x128xf32, #tpu.memory_space<vmem>>, %arg4: memref<10x128xf32, #tpu.memory_space<vmem>>, %arg5: memref<6x128xf32, #tpu.memory_space<vmem>>, %arg6: memref<1x128xf32, #tpu.memory_space<vmem>>, %arg7: memref<32x128xf32, #tpu.memory_space<vmem>>, %arg8: memref<32x1xf32, #tpu.memory_space<vmem>>, %arg9: memref<1x1xf32, #tpu.memory_space<vmem>>, %arg10: memref<8x1xf32, #tpu.memory_space<vmem>>) attributes {dimension_semantics = [], scalar_prefetch = 0 : i64, scratch_operands = 0 : i64, tpu.core_type = #tpu.core_type<tc>} {
    %c0 = arith.constant 0 : index
    %c0_0 = arith.constant 0 : index
    %0 = vector.load %arg0[%c0, %c0_0] : memref<64x3xi32, #tpu.memory_space<vmem>>, vector<64x3xi32>
    %1 = vector.extract_strided_slice %0 {offsets = [0, 0], sizes = [64, 1], strides = [1, 1]} : vector<64x3xi32> to vector<64x1xi32>
    %2 = tpu.iota {dimensions = array<i32: 1>} : vector<64x16xi32>
    %3 = vector.broadcast %1 : vector<64x1xi32> to vector<64x16xi32>
    %4 = arith.cmpi eq, %3, %2 : vector<64x16xi32>
    %5 = arith.extui %4 : vector<64x16xi1> to vector<64x16xi32>
    %6 = arith.sitofp %5 : vector<64x16xi32> to vector<64x16xf32>
    %7 = vector.extract_strided_slice %0 {offsets = [0, 1], sizes = [64, 1], strides = [1, 1]} : vector<64x3xi32> to vector<64x1xi32>
    %8 = tpu.iota {dimensions = array<i32: 1>} : vector<64x7xi32>
    %9 = vector.broadcast %7 : vector<64x1xi32> to vector<64x7xi32>
    %10 = arith.cmpi eq, %9, %8 : vector<64x7xi32>
    %11 = arith.extui %10 : vector<64x7xi1> to vector<64x7xi32>
    %12 = arith.sitofp %11 : vector<64x7xi32> to vector<64x7xf32>
    %13 = vector.extract_strided_slice %0 {offsets = [0, 2], sizes = [64, 1], strides = [1, 1]} : vector<64x3xi32> to vector<64x1xi32>
    %14 = tpu.iota {dimensions = array<i32: 1>} : vector<64x10xi32>
    %15 = vector.broadcast %13 : vector<64x1xi32> to vector<64x10xi32>
    %16 = arith.cmpi eq, %15, %14 : vector<64x10xi32>
    %17 = arith.extui %16 : vector<64x10xi1> to vector<64x10xi32>
    %18 = arith.sitofp %17 : vector<64x10xi32> to vector<64x10xf32>
    %c0_1 = arith.constant 0 : index
    %c0_2 = arith.constant 0 : index
    %19 = vector.load %arg2[%c0_1, %c0_2] : memref<16x128xf32, #tpu.memory_space<vmem>>, vector<16x128xf32>
    %cst = arith.constant dense<0.000000e+00> : vector<64x128xf32>
    %20 = tpu.matmul %6, %19, %cst {dimension_numbers = #tpu.dot_dimension_numbers<[1], [0], [0], [1], [0, 0, 1, 1], [], []>} : vector<64x16xf32>, vector<16x128xf32>, vector<64x128xf32> -> vector<64x128xf32>
    %c0_3 = arith.constant 0 : index
    %c0_4 = arith.constant 0 : index
    %21 = vector.load %arg3[%c0_3, %c0_4] : memref<7x128xf32, #tpu.memory_space<vmem>>, vector<7x128xf32>
    %cst_5 = arith.constant dense<0.000000e+00> : vector<64x128xf32>
    %22 = tpu.matmul %12, %21, %cst_5 {dimension_numbers = #tpu.dot_dimension_numbers<[1], [0], [0], [1], [0, 0, 1, 1], [], []>} : vector<64x7xf32>, vector<7x128xf32>, vector<64x128xf32> -> vector<64x128xf32>
    %23 = arith.addf %20, %22 : vector<64x128xf32>
    %c0_6 = arith.constant 0 : index
    %c0_7 = arith.constant 0 : index
    %24 = vector.load %arg4[%c0_6, %c0_7] : memref<10x128xf32, #tpu.memory_space<vmem>>, vector<10x128xf32>
    %cst_8 = arith.constant dense<0.000000e+00> : vector<64x128xf32>
    %25 = tpu.matmul %18, %24, %cst_8 {dimension_numbers = #tpu.dot_dimension_numbers<[1], [0], [0], [1], [0, 0, 1, 1], [], []>} : vector<64x10xf32>, vector<10x128xf32>, vector<64x128xf32> -> vector<64x128xf32>
    %26 = arith.addf %23, %25 : vector<64x128xf32>
    %c0_9 = arith.constant 0 : index
    %c0_10 = arith.constant 0 : index
    %27 = vector.load %arg1[%c0_9, %c0_10] : memref<64x6xf32, #tpu.memory_space<vmem>>, vector<64x6xf32>
    %c0_11 = arith.constant 0 : index
    %c0_12 = arith.constant 0 : index
    %28 = vector.load %arg5[%c0_11, %c0_12] : memref<6x128xf32, #tpu.memory_space<vmem>>, vector<6x128xf32>
    %cst_13 = arith.constant dense<0.000000e+00> : vector<64x128xf32>
    %29 = tpu.matmul %27, %28, %cst_13 {dimension_numbers = #tpu.dot_dimension_numbers<[1], [0], [0], [1], [0, 0, 1, 1], [], []>} : vector<64x6xf32>, vector<6x128xf32>, vector<64x128xf32> -> vector<64x128xf32>
    %30 = arith.addf %26, %29 : vector<64x128xf32>
    %c0_14 = arith.constant 0 : index
    %c0_15 = arith.constant 0 : index
    %31 = vector.load %arg6[%c0_14, %c0_15] : memref<1x128xf32, #tpu.memory_space<vmem>>, vector<1x128xf32>
    %32 = vector.broadcast %31 : vector<1x128xf32> to vector<64x128xf32>
    %33 = arith.addf %30, %32 : vector<64x128xf32>
    %c0_16 = arith.constant 0 : index
    %c0_17 = arith.constant 0 : index
    %34 = vector.load %arg7[%c0_16, %c0_17] : memref<32x128xf32, #tpu.memory_space<vmem>>, vector<32x128xf32>
    %cst_18 = arith.constant 0.000000e+00 : f32
    %35 = vector.broadcast %cst_18 : f32 to vector<8x32xf32>
    %cst_19 = arith.constant 0.000000e+00 : f32
    %36 = vector.broadcast %cst_19 : f32 to vector<8x32xf32>
    %37 = vector.extract_strided_slice %33 {offsets = [0, 0], sizes = [8, 128], strides = [1, 1]} : vector<64x128xf32> to vector<8x128xf32>
    %cst_20 = arith.constant dense<0.000000e+00> : vector<8x128xf32>
    %38 = tpu.matmul %35, %34, %cst_20 {dimension_numbers = #tpu.dot_dimension_numbers<[1], [0], [0], [1], [0, 0, 1, 1], [], []>} : vector<8x32xf32>, vector<32x128xf32>, vector<8x128xf32> -> vector<8x128xf32>
    %39 = arith.addf %37, %38 : vector<8x128xf32>
    %40 = arith.negf %39 : vector<8x128xf32>
    %41 = math.exp %40 : vector<8x128xf32>
    %cst_21 = arith.constant 1.000000e+00 : f32
    %42 = vector.broadcast %cst_21 : f32 to vector<8x128xf32>
    %43 = arith.addf %42, %41 : vector<8x128xf32>
    %44 = arith.divf %42, %43 : vector<8x128xf32>
    %45 = math.tanh %39 : vector<8x128xf32>
    %46 = vector.extract_strided_slice %44 {offsets = [0, 0], sizes = [8, 32], strides = [1, 1]} : vector<8x128xf32> to vector<8x32xf32>
    %47 = vector.extract_strided_slice %44 {offsets = [0, 32], sizes = [8, 32], strides = [1, 1]} : vector<8x128xf32> to vector<8x32xf32>
    %48 = vector.extract_strided_slice %45 {offsets = [0, 64], sizes = [8, 32], strides = [1, 1]} : vector<8x128xf32> to vector<8x32xf32>
    %49 = vector.extract_strided_slice %44 {offsets = [0, 96], sizes = [8, 32], strides = [1, 1]} : vector<8x128xf32> to vector<8x32xf32>
    %50 = arith.mulf %47, %36 : vector<8x32xf32>
    %51 = arith.mulf %46, %48 : vector<8x32xf32>
    %52 = arith.addf %50, %51 : vector<8x32xf32>
    %53 = math.tanh %52 : vector<8x32xf32>
    %54 = arith.mulf %49, %53 : vector<8x32xf32>
    %55 = vector.extract_strided_slice %33 {offsets = [8, 0], sizes = [8, 128], strides = [1, 1]} : vector<64x128xf32> to vector<8x128xf32>
    %cst_22 = arith.constant dense<0.000000e+00> : vector<8x128xf32>
    %56 = tpu.matmul %54, %34, %cst_22 {dimension_numbers = #tpu.dot_dimension_numbers<[1], [0], [0], [1], [0, 0, 1, 1], [], []>} : vector<8x32xf32>, vector<32x128xf32>, vector<8x128xf32> -> vector<8x128xf32>
    %57 = arith.addf %55, %56 : vector<8x128xf32>
    %58 = arith.negf %57 : vector<8x128xf32>
    %59 = math.exp %58 : vector<8x128xf32>
    %cst_23 = arith.constant 1.000000e+00 : f32
    %60 = vector.broadcast %cst_23 : f32 to vector<8x128xf32>
    %61 = arith.addf %60, %59 : vector<8x128xf32>
    %62 = arith.divf %60, %61 : vector<8x128xf32>
    %63 = math.tanh %57 : vector<8x128xf32>
    %64 = vector.extract_strided_slice %62 {offsets = [0, 0], sizes = [8, 32], strides = [1, 1]} : vector<8x128xf32> to vector<8x32xf32>
    %65 = vector.extract_strided_slice %62 {offsets = [0, 32], sizes = [8, 32], strides = [1, 1]} : vector<8x128xf32> to vector<8x32xf32>
    %66 = vector.extract_strided_slice %63 {offsets = [0, 64], sizes = [8, 32], strides = [1, 1]} : vector<8x128xf32> to vector<8x32xf32>
    %67 = vector.extract_strided_slice %62 {offsets = [0, 96], sizes = [8, 32], strides = [1, 1]} : vector<8x128xf32> to vector<8x32xf32>
    %68 = arith.mulf %65, %52 : vector<8x32xf32>
    %69 = arith.mulf %64, %66 : vector<8x32xf32>
    %70 = arith.addf %68, %69 : vector<8x32xf32>
    %71 = math.tanh %70 : vector<8x32xf32>
    %72 = arith.mulf %67, %71 : vector<8x32xf32>
    %73 = vector.extract_strided_slice %33 {offsets = [16, 0], sizes = [8, 128], strides = [1, 1]} : vector<64x128xf32> to vector<8x128xf32>
    %cst_24 = arith.constant dense<0.000000e+00> : vector<8x128xf32>
    %74 = tpu.matmul %72, %34, %cst_24 {dimension_numbers = #tpu.dot_dimension_numbers<[1], [0], [0], [1], [0, 0, 1, 1], [], []>} : vector<8x32xf32>, vector<32x128xf32>, vector<8x128xf32> -> vector<8x128xf32>
    %75 = arith.addf %73, %74 : vector<8x128xf32>
    %76 = arith.negf %75 : vector<8x128xf32>
    %77 = math.exp %76 : vector<8x128xf32>
    %cst_25 = arith.constant 1.000000e+00 : f32
    %78 = vector.broadcast %cst_25 : f32 to vector<8x128xf32>
    %79 = arith.addf %78, %77 : vector<8x128xf32>
    %80 = arith.divf %78, %79 : vector<8x128xf32>
    %81 = math.tanh %75 : vector<8x128xf32>
    %82 = vector.extract_strided_slice %80 {offsets = [0, 0], sizes = [8, 32], strides = [1, 1]} : vector<8x128xf32> to vector<8x32xf32>
    %83 = vector.extract_strided_slice %80 {offsets = [0, 32], sizes = [8, 32], strides = [1, 1]} : vector<8x128xf32> to vector<8x32xf32>
    %84 = vector.extract_strided_slice %81 {offsets = [0, 64], sizes = [8, 32], strides = [1, 1]} : vector<8x128xf32> to vector<8x32xf32>
    %85 = vector.extract_strided_slice %80 {offsets = [0, 96], sizes = [8, 32], strides = [1, 1]} : vector<8x128xf32> to vector<8x32xf32>
    %86 = arith.mulf %83, %70 : vector<8x32xf32>
    %87 = arith.mulf %82, %84 : vector<8x32xf32>
    %88 = arith.addf %86, %87 : vector<8x32xf32>
    %89 = math.tanh %88 : vector<8x32xf32>
    %90 = arith.mulf %85, %89 : vector<8x32xf32>
    %91 = vector.extract_strided_slice %33 {offsets = [24, 0], sizes = [8, 128], strides = [1, 1]} : vector<64x128xf32> to vector<8x128xf32>
    %cst_26 = arith.constant dense<0.000000e+00> : vector<8x128xf32>
    %92 = tpu.matmul %90, %34, %cst_26 {dimension_numbers = #tpu.dot_dimension_numbers<[1], [0], [0], [1], [0, 0, 1, 1], [], []>} : vector<8x32xf32>, vector<32x128xf32>, vector<8x128xf32> -> vector<8x128xf32>
    %93 = arith.addf %91, %92 : vector<8x128xf32>
    %94 = arith.negf %93 : vector<8x128xf32>
    %95 = math.exp %94 : vector<8x128xf32>
    %cst_27 = arith.constant 1.000000e+00 : f32
    %96 = vector.broadcast %cst_27 : f32 to vector<8x128xf32>
    %97 = arith.addf %96, %95 : vector<8x128xf32>
    %98 = arith.divf %96, %97 : vector<8x128xf32>
    %99 = math.tanh %93 : vector<8x128xf32>
    %100 = vector.extract_strided_slice %98 {offsets = [0, 0], sizes = [8, 32], strides = [1, 1]} : vector<8x128xf32> to vector<8x32xf32>
    %101 = vector.extract_strided_slice %98 {offsets = [0, 32], sizes = [8, 32], strides = [1, 1]} : vector<8x128xf32> to vector<8x32xf32>
    %102 = vector.extract_strided_slice %99 {offsets = [0, 64], sizes = [8, 32], strides = [1, 1]} : vector<8x128xf32> to vector<8x32xf32>
    %103 = vector.extract_strided_slice %98 {offsets = [0, 96], sizes = [8, 32], strides = [1, 1]} : vector<8x128xf32> to vector<8x32xf32>
    %104 = arith.mulf %101, %88 : vector<8x32xf32>
    %105 = arith.mulf %100, %102 : vector<8x32xf32>
    %106 = arith.addf %104, %105 : vector<8x32xf32>
    %107 = math.tanh %106 : vector<8x32xf32>
    %108 = arith.mulf %103, %107 : vector<8x32xf32>
    %109 = vector.extract_strided_slice %33 {offsets = [32, 0], sizes = [8, 128], strides = [1, 1]} : vector<64x128xf32> to vector<8x128xf32>
    %cst_28 = arith.constant dense<0.000000e+00> : vector<8x128xf32>
    %110 = tpu.matmul %108, %34, %cst_28 {dimension_numbers = #tpu.dot_dimension_numbers<[1], [0], [0], [1], [0, 0, 1, 1], [], []>} : vector<8x32xf32>, vector<32x128xf32>, vector<8x128xf32> -> vector<8x128xf32>
    %111 = arith.addf %109, %110 : vector<8x128xf32>
    %112 = arith.negf %111 : vector<8x128xf32>
    %113 = math.exp %112 : vector<8x128xf32>
    %cst_29 = arith.constant 1.000000e+00 : f32
    %114 = vector.broadcast %cst_29 : f32 to vector<8x128xf32>
    %115 = arith.addf %114, %113 : vector<8x128xf32>
    %116 = arith.divf %114, %115 : vector<8x128xf32>
    %117 = math.tanh %111 : vector<8x128xf32>
    %118 = vector.extract_strided_slice %116 {offsets = [0, 0], sizes = [8, 32], strides = [1, 1]} : vector<8x128xf32> to vector<8x32xf32>
    %119 = vector.extract_strided_slice %116 {offsets = [0, 32], sizes = [8, 32], strides = [1, 1]} : vector<8x128xf32> to vector<8x32xf32>
    %120 = vector.extract_strided_slice %117 {offsets = [0, 64], sizes = [8, 32], strides = [1, 1]} : vector<8x128xf32> to vector<8x32xf32>
    %121 = vector.extract_strided_slice %116 {offsets = [0, 96], sizes = [8, 32], strides = [1, 1]} : vector<8x128xf32> to vector<8x32xf32>
    %122 = arith.mulf %119, %106 : vector<8x32xf32>
    %123 = arith.mulf %118, %120 : vector<8x32xf32>
    %124 = arith.addf %122, %123 : vector<8x32xf32>
    %125 = math.tanh %124 : vector<8x32xf32>
    %126 = arith.mulf %121, %125 : vector<8x32xf32>
    %127 = vector.extract_strided_slice %33 {offsets = [40, 0], sizes = [8, 128], strides = [1, 1]} : vector<64x128xf32> to vector<8x128xf32>
    %cst_30 = arith.constant dense<0.000000e+00> : vector<8x128xf32>
    %128 = tpu.matmul %126, %34, %cst_30 {dimension_numbers = #tpu.dot_dimension_numbers<[1], [0], [0], [1], [0, 0, 1, 1], [], []>} : vector<8x32xf32>, vector<32x128xf32>, vector<8x128xf32> -> vector<8x128xf32>
    %129 = arith.addf %127, %128 : vector<8x128xf32>
    %130 = arith.negf %129 : vector<8x128xf32>
    %131 = math.exp %130 : vector<8x128xf32>
    %cst_31 = arith.constant 1.000000e+00 : f32
    %132 = vector.broadcast %cst_31 : f32 to vector<8x128xf32>
    %133 = arith.addf %132, %131 : vector<8x128xf32>
    %134 = arith.divf %132, %133 : vector<8x128xf32>
    %135 = math.tanh %129 : vector<8x128xf32>
    %136 = vector.extract_strided_slice %134 {offsets = [0, 0], sizes = [8, 32], strides = [1, 1]} : vector<8x128xf32> to vector<8x32xf32>
    %137 = vector.extract_strided_slice %134 {offsets = [0, 32], sizes = [8, 32], strides = [1, 1]} : vector<8x128xf32> to vector<8x32xf32>
    %138 = vector.extract_strided_slice %135 {offsets = [0, 64], sizes = [8, 32], strides = [1, 1]} : vector<8x128xf32> to vector<8x32xf32>
    %139 = vector.extract_strided_slice %134 {offsets = [0, 96], sizes = [8, 32], strides = [1, 1]} : vector<8x128xf32> to vector<8x32xf32>
    %140 = arith.mulf %137, %124 : vector<8x32xf32>
    %141 = arith.mulf %136, %138 : vector<8x32xf32>
    %142 = arith.addf %140, %141 : vector<8x32xf32>
    %143 = math.tanh %142 : vector<8x32xf32>
    %144 = arith.mulf %139, %143 : vector<8x32xf32>
    %145 = vector.extract_strided_slice %33 {offsets = [48, 0], sizes = [8, 128], strides = [1, 1]} : vector<64x128xf32> to vector<8x128xf32>
    %cst_32 = arith.constant dense<0.000000e+00> : vector<8x128xf32>
    %146 = tpu.matmul %144, %34, %cst_32 {dimension_numbers = #tpu.dot_dimension_numbers<[1], [0], [0], [1], [0, 0, 1, 1], [], []>} : vector<8x32xf32>, vector<32x128xf32>, vector<8x128xf32> -> vector<8x128xf32>
    %147 = arith.addf %145, %146 : vector<8x128xf32>
    %148 = arith.negf %147 : vector<8x128xf32>
    %149 = math.exp %148 : vector<8x128xf32>
    %cst_33 = arith.constant 1.000000e+00 : f32
    %150 = vector.broadcast %cst_33 : f32 to vector<8x128xf32>
    %151 = arith.addf %150, %149 : vector<8x128xf32>
    %152 = arith.divf %150, %151 : vector<8x128xf32>
    %153 = math.tanh %147 : vector<8x128xf32>
    %154 = vector.extract_strided_slice %152 {offsets = [0, 0], sizes = [8, 32], strides = [1, 1]} : vector<8x128xf32> to vector<8x32xf32>
    %155 = vector.extract_strided_slice %152 {offsets = [0, 32], sizes = [8, 32], strides = [1, 1]} : vector<8x128xf32> to vector<8x32xf32>
    %156 = vector.extract_strided_slice %153 {offsets = [0, 64], sizes = [8, 32], strides = [1, 1]} : vector<8x128xf32> to vector<8x32xf32>
    %157 = vector.extract_strided_slice %152 {offsets = [0, 96], sizes = [8, 32], strides = [1, 1]} : vector<8x128xf32> to vector<8x32xf32>
    %158 = arith.mulf %155, %142 : vector<8x32xf32>
    %159 = arith.mulf %154, %156 : vector<8x32xf32>
    %160 = arith.addf %158, %159 : vector<8x32xf32>
    %161 = math.tanh %160 : vector<8x32xf32>
    %162 = arith.mulf %157, %161 : vector<8x32xf32>
    %163 = vector.extract_strided_slice %33 {offsets = [56, 0], sizes = [8, 128], strides = [1, 1]} : vector<64x128xf32> to vector<8x128xf32>
    %cst_34 = arith.constant dense<0.000000e+00> : vector<8x128xf32>
    %164 = tpu.matmul %162, %34, %cst_34 {dimension_numbers = #tpu.dot_dimension_numbers<[1], [0], [0], [1], [0, 0, 1, 1], [], []>} : vector<8x32xf32>, vector<32x128xf32>, vector<8x128xf32> -> vector<8x128xf32>
    %165 = arith.addf %163, %164 : vector<8x128xf32>
    %166 = arith.negf %165 : vector<8x128xf32>
    %167 = math.exp %166 : vector<8x128xf32>
    %cst_35 = arith.constant 1.000000e+00 : f32
    %168 = vector.broadcast %cst_35 : f32 to vector<8x128xf32>
    %169 = arith.addf %168, %167 : vector<8x128xf32>
    %170 = arith.divf %168, %169 : vector<8x128xf32>
    %171 = math.tanh %165 : vector<8x128xf32>
    %172 = vector.extract_strided_slice %170 {offsets = [0, 0], sizes = [8, 32], strides = [1, 1]} : vector<8x128xf32> to vector<8x32xf32>
    %173 = vector.extract_strided_slice %170 {offsets = [0, 32], sizes = [8, 32], strides = [1, 1]} : vector<8x128xf32> to vector<8x32xf32>
    %174 = vector.extract_strided_slice %171 {offsets = [0, 64], sizes = [8, 32], strides = [1, 1]} : vector<8x128xf32> to vector<8x32xf32>
    %175 = vector.extract_strided_slice %170 {offsets = [0, 96], sizes = [8, 32], strides = [1, 1]} : vector<8x128xf32> to vector<8x32xf32>
    %176 = arith.mulf %173, %160 : vector<8x32xf32>
    %177 = arith.mulf %172, %174 : vector<8x32xf32>
    %178 = arith.addf %176, %177 : vector<8x32xf32>
    %179 = math.tanh %178 : vector<8x32xf32>
    %180 = arith.mulf %175, %179 : vector<8x32xf32>
    %c0_36 = arith.constant 0 : index
    %c0_37 = arith.constant 0 : index
    %181 = vector.load %arg8[%c0_36, %c0_37] : memref<32x1xf32, #tpu.memory_space<vmem>>, vector<32x1xf32>
    %cst_38 = arith.constant dense<0.000000e+00> : vector<8x1xf32>
    %182 = tpu.matmul %180, %181, %cst_38 {dimension_numbers = #tpu.dot_dimension_numbers<[1], [0], [0], [1], [0, 0, 1, 1], [], []>} : vector<8x32xf32>, vector<32x1xf32>, vector<8x1xf32> -> vector<8x1xf32>
    %c0_39 = arith.constant 0 : index
    %c0_40 = arith.constant 0 : index
    %183 = vector.load %arg9[%c0_39, %c0_40] : memref<1x1xf32, #tpu.memory_space<vmem>>, vector<1x1xf32>
    %184 = vector.broadcast %183 : vector<1x1xf32> to vector<8x1xf32>
    %185 = arith.addf %182, %184 : vector<8x1xf32>
    %186 = arith.negf %185 : vector<8x1xf32>
    %187 = math.exp %186 : vector<8x1xf32>
    %cst_41 = arith.constant 1.000000e+00 : f32
    %188 = vector.broadcast %cst_41 : f32 to vector<8x1xf32>
    %189 = arith.addf %188, %187 : vector<8x1xf32>
    %190 = arith.divf %188, %189 : vector<8x1xf32>
    %c0_42 = arith.constant 0 : index
    %c0_43 = arith.constant 0 : index
    %191 = vector.load %arg10[%c0_42, %c0_43] : memref<8x1xf32, #tpu.memory_space<vmem>>, vector<8x1xf32>
    tpu.vector_store %arg10[%c0_42, %c0_43], %190 {strides = array<i32>} : memref<8x1xf32, #tpu.memory_space<vmem>>, vector<8x1xf32>,
    return
  }
}

</mosaic_0001>

<bundles_post_ra>
// kernel: candle_lstm_forward.1
= control target key start
LH: loop header
LB: loop body
LE: loop exit
PB: predicated region body
PF: predicated region fallthrough
CT: control target
= control target key end

     0   :  { %v2160_v0 = vmov 1   ;;  %vm219_vm0 = vcmask 1046528   ;;  %v2161_v13 = vmov 0   ;;  %v2162_v14 = vmov 2   ;;  %s2534_s0 = inlined_call_operand.vmem [shape: s32[64,3], index: 0, kind: input, shape index: {}]   ;;  %s2535_s3 = inlined_call_operand.vmem [shape: f32[7,128], index: 3, kind: input, shape index: {}]   ;;  %s2536_s2 = inlined_call_operand.vmem [shape: f32[16,128], index: 2, kind: input, shape index: {}]   ;;  %s2537_s7 = inlined_call_operand.vmem [shape: f32[32,128], index: 7, kind: input, shape index: {}]   ;;  %s2538_s4 = inlined_call_operand.vmem [shape: f32[10,128], index: 4, kind: input, shape index: {}]   ;;  %s2539_s5 = inlined_call_operand.vmem [shape: f32[6,128], index: 5, kind: input, shape index: {}]   ;;  %s2540_s1 = inlined_call_operand.vmem [shape: f32[64,6], index: 1, kind: input, shape index: {}]   ;;  %s2541_s6 = inlined_call_operand.vmem [shape: f32[1,128], index: 6, kind: input, shape index: {}]   ;;  %s2542_s8 = inlined_call_operand.vmem [shape: f32[32,1], index: 8, kind: input, shape index: {}]   ;;  %s2543_s9 = inlined_call_operand.<no memory space> [shape: f32[1,1], index: 9, kind: input, shape index: {}]   ;;  %s2544_s10 = inlined_call_operand.vmem [shape: f32[8,1], index: 10, kind: output, shape index: {}]  }
   0x1   :  { %2087 = vset.pattern.permute.xlu1 %v2160_v0  ;;  %2086 = vset.pattern.permute.xlu0 %v2160_v0  ;;  %v39_v1 = vld [vmem:[%s2534_s0 + $0x10] sm:$0xff]  ;;  %v37_v2 = vld [vmem:[%s2534_s0] sm:$0xff]  ;;  %v40_v3 = vld [vmem:[%s2534_s0 + $0x18] sm:$0xff]  ;;  %v2163_v18 = vmov 0.0|0.0   ;;  %vm2164_vm1 = vmmov 0   ;;  %v2165_v22 = vmov 0.0   ;;  %v45_v23 = vlaneseq }
   0x2   :  { %102 = vperm.xlu1 %2087, %v39_v1   ;;  %96 = vperm.xlu0 %2086, %v37_v2   ;;  %v38_v4 = vld [vmem:[%s2534_s0 + $0x8] sm:$0xff]  ;;  %v193_v5 = vld [vmem:[%s2535_s3] sm:$0x7f]  ;;  %v44_v11 = vld [vmem:[%s2534_s0 + $0x38] sm:$0xff]  ;;  %vm194_vm2 = vcmask 56320   ;;  %vm485_vm4 = vcmask 1041408  }
   0x3   :  { %v42_v6 = vld [vmem:[%s2534_s0 + $0x28] sm:$0xff]  ;;  %v41_v7 = vld [vmem:[%s2534_s0 + $0x20] sm:$0xff]  ;;  %1830 = vmatprep.subr.msk.mxu0 %vm219_vm0, %v193_v5  ;;  %v43_v12 = vld [vmem:[%s2534_s0 + $0x30] sm:$0xff]  ;;  %1999 = vmatprep.subr.bf16.mxu1 %v2163_v18  ;;  %v2290_v24 = vand.u32 127, %v45_v23  ;;  %vm2166_vm7 = vmmov 1   ;;  %vm328_vm14 = vcmask 130048  }
   0x4   :  { %1831 = vmatpush3.msk.msra.mxu0 %vm219_vm0, %v193_v5  ;;  %v191_v8 = vld [vmem:[%s2536_s2] sm:$0xff]  ;;  %v192_v9 = vld [vmem:[%s2536_s2 + $0x8] sm:$0xff]  ;;  %v770_v19 = vld [vmem:[%s2537_s7 + $0x10] sm:$0xff]  ;;  %1898 = vmatprep.mubr.msk.f32.mxu1 %vm2164_vm1, %v2165_v22 }
   0x5   :  { %v2251_v10 = vpack.c.bf16 %v192_v9, %v191_v8  ;;  %v768_v15 = vld [vmem:[%s2537_s7] sm:$0xff]  ;;  %v769_v16 = vld [vmem:[%s2537_s7 + $0x8] sm:$0xff]  ;;  %v771_v20 = vld [vmem:[%s2537_s7 + $0x18] sm:$0xff] }
   0x6   :  { %105 = vperm.xlu1 %2087, %v40_v3   ;;  %99 = vperm.xlu0 %2086, %v38_v4   ;;  %v2266_v17 = vpack.c.bf16 %v769_v16, %v768_v15  ;;  %v2277_v21 = vpack.c.bf16 %v771_v20, %v770_v19  ;;  %v458_v28 = vld [vmem:[%s2538_s4] sm:$0xff]  ;;  %v459_v29 = vld [vmem:[%s2538_s4 + $0x8] sm:$0x3]  ;;  %vm2304_vm8 = vmpackc.low %vm485_vm4, %vm2166_vm7  ;;  %vm636_vm4 = vcmask 1045504  }
   0x7   :  { %1990 = vmatprep.subr.bf16.mxu0 %v2251_v10  ;;  %v1993_v32 = vpack.c.bf16 %v459_v29, %v458_v28  ;;  %v610_v51 = vld [vmem:[%s2539_s5] sm:$0x3f]  ;;  %v603_v15 = vld [vmem:[%s2540_s1 + $0x8] sm:$0xff]  ;;  %v604_v16 = vld [vmem:[%s2540_s1 + $0x10] sm:$0xff] }
   0x8   :  { %2001 = vmatpush3.bf16.msra.mxu1 %v2266_v17  ;;  %v605_v19 = vld [vmem:[%s2540_s1 + $0x18] sm:$0xff]  ;;  %v606_v20 = vld [vmem:[%s2540_s1 + $0x20] sm:$0xff]  ;;  %v607_v23 = vld [vmem:[%s2540_s1 + $0x28] sm:$0xff] }
   0x9   :  { %2002 = vmatprep.subr.bf16.mxu1 %v2163_v18  ;;  %v1728_v28 = vld [vmem:[%s2541_s6] ss:$0 sm:$0xff]  ;;  %s2168_s6 = smov 32  }
   0xa   :  { %111 = vperm.xlu1 %2087, %v42_v6   ;;  %108 = vperm.xlu0 %2086, %v41_v7  }
   0xc   :  { %2004 = vmatpush3.bf16.msra.mxu1 %v2277_v21 }
   0xd   :  { %2005 = vmatprep.subr.bf16.mxu1 %v2163_v18 }
   0xe   :  { %117 = vperm.xlu1 %2087, %v44_v11   ;;  %114 = vperm.xlu0 %2086, %v43_v12  }
   0xf   :  { %1899 = vmatmul.mubr.f32.vlgmr.msra.gmra.mrb[0].mxu1 %v2165_v22 }
  0x10   :  { %2007 = vmatpush3.bf16.msra.mxu1 %v2266_v17  ;;  %1909 = vmatprep.mubr.msk.f32.mxu1 %vm2164_vm1, %v2165_v22 }
  0x11   :  { %2008 = vmatprep.subr.bf16.mxu1 %v2163_v18 }
  0x12   :  { %2089 = vset.pattern.permute.xlu1 %v2161_v13  ;;  %2088 = vset.pattern.permute.xlu0 %v2161_v13  ;;  %v602_v13 = vld [vmem:[%s2540_s1] sm:$0xff] }
  0x13   :  { %51 = vperm.xlu1 %2089, %v38_v4   ;;  %48 = vperm.xlu0 %2088, %v37_v2  }
  0x14   :  { %2010 = vmatpush3.bf16.msra.mxu1 %v2277_v21 }
  0x15   :  { %2011 = vmatprep.subr.bf16.mxu1 %v2163_v18 }
  0x17   :  { %54 = vperm.xlu1 %2089, %v39_v1   ;;  %57 = vperm.xlu0 %2088, %v40_v3  }
  0x1b   :  { %60 = vperm.xlu1 %2089, %v41_v7   ;;  %63 = vperm.xlu0 %2088, %v42_v6  }
  0x1f   :  { %66 = vperm.xlu1 %2089, %v43_v12   ;;  %69 = vperm.xlu0 %2088, %v44_v11  }
  0x23   :  { %2090 = vset.pattern.permute.xlu1 %v2162_v14  ;;  %2091 = vset.pattern.permute.xlu0 %v2162_v14 }
  0x24   :  { %144 = vperm.xlu1 %2090, %v37_v2   ;;  %147 = vperm.xlu0 %2091, %v38_v4  }
  0x28   :  { %150 = vperm.xlu1 %2090, %v39_v1   ;;  %156 = vperm.xlu0 %2091, %v41_v7  }
  0x2c   :  { %153 = vperm.xlu1 %2090, %v40_v3   ;;  %162 = vperm.xlu0 %2091, %v43_v12  }
  0x30   :  { %159 = vperm.xlu1 %2090, %v42_v6  }
  0x34   :  { %165 = vperm.xlu1 %2090, %v44_v11  }
  0x81   :  { %v103_v25 = vpop.permute.xlu1 %102  ;;  %v97_v26 = vpop.permute.xlu0 %96 }
  0x82   :  { %vm119_vm3 = vcmp.eq.s32.totalorder %v97_v26, %v2290_v24  ;;  %vm121_vm5 = vcmp.eq.s32.totalorder %v103_v25, %v2290_v24  ;;  %v609_v25 = vld [vmem:[%s2540_s1 + $0x38] sm:$0xff] }
  0x83   :  { %v1677_v27 = vsel %vm119_vm3, 1.0, %v2165_v22  ;;  %v1679_v35 = vsel %vm121_vm5, 1.0, %v2165_v22 }
  0x84   :  { %1832 = vmatprep.mubr.msk.f32.mxu0 %vm194_vm2, %v1677_v27 }
  0x85   :  { %v106_v30 = vpop.permute.xlu1 %105  ;;  %v100_v31 = vpop.permute.xlu0 %99 }
  0x86   :  { %vm120_vm6 = vcmp.eq.s32.totalorder %v100_v31, %v2290_v24  ;;  %vm122_vm9 = vcmp.eq.s32.totalorder %v106_v30, %v2290_v24 }
  0x87   :  { %v1678_v33 = vsel %vm120_vm6, 1.0, %v2165_v22  ;;  %v1680_v38 = vsel %vm122_vm9, 1.0, %v2165_v22  ;;  %vm460_vm9 = vcmask 80896  }
  0x88   :  { %1833 = vmatmul.mubr.msk.f32.vlgmr.msra.gmra.mrb[0].mxu0 %vm194_vm2, %v1678_v33 }
  0x89   :  { %v112_v36 = vpop.permute.xlu1 %111  ;;  %1835 = vmatprep.mubr.msk.f32.mxu0 %vm194_vm2, %v1679_v35  ;;  %v109_v37 = vpop.permute.xlu0 %108  ;;  %1992 = vmatpush3.bf16.msra.mxu0 %v2251_v10 }
  0x8a   :  { %vm123_vm10 = vcmp.eq.s32.totalorder %v109_v37, %v2290_v24  ;;  %1995 = vmatprep.subr.msk.bf16.mxu0 %vm2304_vm8, %v1993_v32  ;;  %vm124_vm11 = vcmp.eq.s32.totalorder %v112_v36, %v2290_v24 }
  0x8b   :  { %v1681_v39 = vsel %vm123_vm10, 1.0, %v2165_v22  ;;  %v1682_v42 = vsel %vm124_vm11, 1.0, %v2165_v22 }
  0x8c   :  { %1836 = vmatmul.mubr.msk.f32.gmra.mrb[2].mxu0 %vm194_vm2, %v1680_v38 }
  0x8d   :  { %v118_v40 = vpop.permute.xlu1 %117  ;;  %1838 = vmatprep.mubr.msk.f32.mxu0 %vm194_vm2, %v1681_v39  ;;  %v115_v41 = vpop.permute.xlu0 %114 }
  0x8e   :  { %vm125_vm12 = vcmp.eq.s32.totalorder %v115_v41, %v2290_v24  ;;  %vm126_vm13 = vcmp.eq.s32.totalorder %v118_v40, %v2290_v24 }
  0x8f   :  { %v1683_v43 = vsel %vm125_vm12, 1.0, %v2165_v22  ;;  %v1684_v46 = vsel %vm126_vm13, 1.0, %v2165_v22 }
  0x90   :  { %1839 = vmatmul.mubr.msk.f32.gmra.mrb[4].mxu0 %vm194_vm2, %v1682_v42 }
  0x91   :  { %1841 = vmatprep.mubr.msk.f32.mxu0 %vm194_vm2, %v1683_v43 }
  0x92   :  { %v52_v44 = vpop.permute.xlu1 %51  ;;  %v49_v45 = vpop.permute.xlu0 %48 }
  0x93   :  { %vm71_vm15 = vcmp.eq.s32.totalorder %v49_v45, %v2290_v24  ;;  %vm72_vm0 = vcmp.eq.s32.totalorder %v52_v44, %v2290_v24 }
  0x94   :  { %v1669_v47 = vsel %vm71_vm15, 1.0, %v2165_v22  ;;  %1842 = vmatmul.mubr.msk.f32.gmra.mrb[6].mxu0 %vm194_vm2, %v1684_v46  ;;  %v1670_v50 = vsel %vm72_vm0, 1.0, %v2165_v22 }
  0x95   :  { %1848 = vmatprep.mubr.msk.f32.mxu0 %vm328_vm14, %v1669_v47 }
  0x96   :  { %v55_v48 = vpop.permute.xlu1 %54  ;;  %v58_v49 = vpop.permute.xlu0 %57 }
  0x97   :  { %vm73_vm3 = vcmp.eq.s32.totalorder %v55_v48, %v2290_v24  ;;  %vm74_vm5 = vcmp.eq.s32.totalorder %v58_v49, %v2290_v24 }
  0x98   :  { %v1671_v52 = vsel %vm73_vm3, 1.0, %v2165_v22  ;;  %1849 = vmatmul.mubr.msk.f32.vlgmr.msra.gmra.mrb[0].mxu0 %vm328_vm14, %v1670_v50  ;;  %v1672_v55 = vsel %vm74_vm5, 1.0, %v2165_v22  ;;  %vm772_vm5 = vcmask 261120  }
  0x99   :  { %1851 = vmatprep.mubr.msk.f32.mxu0 %vm328_vm14, %v1671_v52  ;;  %1998 = vmatpush3.bf16.msk.msra.mxu0 %vm2304_vm8, %v1993_v32 }
  0x9a   :  { %v61_v53 = vpop.permute.xlu1 %60  ;;  %v64_v54 = vpop.permute.xlu0 %63  ;;  %1876 = vmatprep.subr.msk.mxu0 %vm636_vm4, %v610_v51 }
  0x9b   :  { %vm75_vm2 = vcmp.eq.s32.totalorder %v61_v53, %v2290_v24  ;;  %vm76_vm6 = vcmp.eq.s32.totalorder %v64_v54, %v2290_v24 }
  0x9c   :  { %v1673_v56 = vsel %vm75_vm2, 1.0, %v2165_v22  ;;  %1852 = vmatmul.mubr.msk.f32.gmra.mrb[2].mxu0 %vm328_vm14, %v1672_v55  ;;  %v1674_v59 = vsel %vm76_vm6, 1.0, %v2165_v22 }
  0x9d   :  { %1854 = vmatprep.mubr.msk.f32.mxu0 %vm328_vm14, %v1673_v56 }
  0x9e   :  { %v67_v57 = vpop.permute.xlu1 %66  ;;  %v70_v58 = vpop.permute.xlu0 %69 }
  0x9f   :  { %vm77_vm7 = vcmp.eq.s32.totalorder %v67_v57, %v2290_v24  ;;  %vm78_vm8 = vcmp.eq.s32.totalorder %v70_v58, %v2290_v24 }
  0xa0   :  { %v1675_v60 = vsel %vm77_vm7, 1.0, %v2165_v22  ;;  %1855 = vmatmul.mubr.msk.f32.gmra.mrb[4].mxu0 %vm328_vm14, %v1674_v59  ;;  %v1676_v61 = vsel %vm78_vm8, 1.0, %v2165_v22 }
  0xa1   :  { %1857 = vmatprep.mubr.msk.f32.mxu0 %vm328_vm14, %v1675_v60 }
  0xa3   :  { %v145_v62 = vpop.permute.xlu1 %144  ;;  %v148_v63 = vpop.permute.xlu0 %147 }
  0xa4   :  { %vm167_vm10 = vcmp.eq.s32.totalorder %v145_v62, %v2290_v24  ;;  %vm168_vm11 = vcmp.eq.s32.totalorder %v148_v63, %v2290_v24  ;;  %1858 = vmatmul.mubr.msk.f32.gmra.mrb[6].mxu0 %vm328_vm14, %v1676_v61 }
  0xa5   :  { %v1685_v0 = vsel %vm167_vm10, 1.0, %v2165_v22  ;;  %v1686_v1 = vsel %vm168_vm11, 1.0, %v2165_v22 }
  0xa6   :  { %1864 = vmatprep.mubr.msk.f32.mxu0 %vm460_vm9, %v1685_v0 }
  0xa7   :  { %v151_v2 = vpop.permute.xlu1 %150  ;;  %v157_v3 = vpop.permute.xlu0 %156 }
  0xa8   :  { %vm169_vm12 = vcmp.eq.s32.totalorder %v151_v2, %v2290_v24  ;;  %1865 = vmatmul.mubr.msk.f32.vlgmr.msra.gmra.mrb[0].mxu0 %vm460_vm9, %v1686_v1  ;;  %vm171_vm13 = vcmp.eq.s32.totalorder %v157_v3, %v2290_v24 }
  0xa9   :  { %v1687_v4 = vsel %vm169_vm12, 1.0, %v2165_v22  ;;  %1877 = vmatpush3.msk.msra.mxu0 %vm636_vm4, %v610_v51  ;;  %v1689_v8 = vsel %vm171_vm13, 1.0, %v2165_v22  ;;  %vm611_vm4 = vcmask 48128  }
  0xaa   :  { %1867 = vmatprep.mubr.msk.f32.mxu0 %vm460_vm9, %v1687_v4  ;;  %2047 = vmatprep.subr.bf16.mxu0 %v2163_v18 }
  0xab   :  { %v154_v5 = vpop.permute.xlu1 %153  ;;  %v163_v6 = vpop.permute.xlu0 %162 }
  0xac   :  { %vm170_vm14 = vcmp.eq.s32.totalorder %v154_v5, %v2290_v24  ;;  %vm173_vm15 = vcmp.eq.s32.totalorder %v163_v6, %v2290_v24 }
  0xad   :  { %v1688_v7 = vsel %vm170_vm14, 1.0, %v2165_v22  ;;  %v1691_v11 = vsel %vm173_vm15, 1.0, %v2165_v22 }
  0xae   :  { %1868 = vmatmul.mubr.msk.f32.gmra.mrb[2].mxu0 %vm460_vm9, %v1688_v7 }
  0xaf   :  { %v160_v9 = vpop.permute.xlu1 %159  ;;  %1870 = vmatprep.mubr.msk.f32.mxu0 %vm460_vm9, %v1689_v8 }
  0xb0   :  { %vm172_vm0 = vcmp.eq.s32.totalorder %v160_v9, %v2290_v24 }
  0xb1   :  { %v1690_v10 = vsel %vm172_vm0, 1.0, %v2165_v22 }
  0xb2   :  { %1871 = vmatmul.mubr.msk.f32.gmra.mrb[4].mxu0 %vm460_vm9, %v1690_v10 }
  0xb3   :  { %v166_v12 = vpop.permute.xlu1 %165  ;;  %1873 = vmatprep.mubr.msk.f32.mxu0 %vm460_vm9, %v1691_v11 }
  0xb4   :  { %vm174_vm3 = vcmp.eq.s32.totalorder %v166_v12, %v2290_v24  ;;  %v608_v24 = vld [vmem:[%s2540_s1 + $0x30] sm:$0xff]  ;;  %s2167_s1 = smov 64  }
  0xb5   :  { %v1692_v14 = vsel %vm174_vm3, 1.0, %v2165_v22 }
  0xb6   :  { %1874 = vmatmul.mubr.msk.f32.gmra.mrb[6].mxu0 %vm460_vm9, %v1692_v14 }
  0xb7   :  { %1878 = vmatprep.mubr.msk.f32.mxu0 %vm611_vm4, %v602_v13 }
  0xba   :  { %1879 = vmatmul.mubr.msk.f32.vlgmr.msra.gmra.mrb[0].mxu0 %vm611_vm4, %v603_v15 }
  0xbb   :  { %1881 = vmatprep.mubr.msk.f32.mxu0 %vm611_vm4, %v604_v16 }
  0xbe   :  { %1882 = vmatmul.mubr.msk.f32.gmra.mrb[2].mxu0 %vm611_vm4, %v605_v19 }
  0xbf   :  { %1884 = vmatprep.mubr.msk.f32.mxu0 %vm611_vm4, %v606_v20 }
  0xc2   :  { %1885 = vmatmul.mubr.msk.f32.gmra.mrb[4].mxu0 %vm611_vm4, %v607_v23 }
  0xc3   :  { %1887 = vmatprep.mubr.msk.f32.mxu0 %vm611_vm4, %v608_v24 }
  0xc6   :  { %1888 = vmatmul.mubr.msk.f32.gmra.mrb[6].mxu0 %vm611_vm4, %v609_v25 }
  0xc7   :  { %1986 = vmatprep.mubr.msk.f32.mxu0 %vm2164_vm1, %v2165_v22 }
  0xe2   :  { %v842_v26 = vpop.f32.mrb[0].mxu1 }
  0xe3   :  { %v1900_v27 = vpop.f32.mrb[1].mxu1 }
 0x18d   :  { %v1880_v29 = vpop.f32.mrb[0].mxu0 }
 0x18e   :  { %v761_v30 = vadd.f32 %v1880_v29, %v1728_v28  ;;  %v706_v31 = vpop.f32.mrb[1].mxu0 }
 0x18f   :  { %v760_v32 = vadd.f32 %v1728_v28, %v706_v31 }
 0x191   :  { %v846_v33 = vadd.f32 %v842_v26, %v760_v32  ;;  %v1883_v34 = vpop.f32.mrb[2].mxu0 }
 0x192   :  { %v2422_v35 = vadd.f32 %v1883_v34, %v1728_v28  ;;  %v716_v36 = vpop.f32.mrb[3].mxu0 }
 0x193   :  { %2092 = vtanh.f32 %v846_v33  ;;  %v2424_v37 = vadd.f32 %v1728_v28, %v716_v36  ;;  %v1729_v47 = vmul.f32 -1.442695, %v846_v33 }
 0x195   :  { %v1886_v38 = vpop.f32.mrb[4].mxu0  ;;  %2094 = vpow2.f32 %v1729_v47 }
 0x196   :  { %v2426_v39 = vadd.f32 %v1886_v38, %v1728_v28  ;;  %v726_v40 = vpop.f32.mrb[5].mxu0 }
 0x197   :  { %v2428_v41 = vadd.f32 %v1728_v28, %v726_v40 }
 0x199   :  { %v1889_v42 = vpop.f32.mrb[6].mxu0 }
 0x19a   :  { %v2430_v43 = vadd.f32 %v1889_v42, %v1728_v28  ;;  %v736_v44 = vpop.f32.mrb[7].mxu0 }
 0x19b   :  { %v2432_v45 = vadd.f32 %v1728_v28, %v736_v44 }
 0x19d   :  { %v2093_v46 = vpop.eup %2092 }
 0x19e   :  { %856 = vrot.lane.b32.xlu0 %v2093_v46, %s2167_s1 }
 0x19f   :  { %v2095_v48 = vpop.eup %2094 }
 0x1a0   :  { %v850_v49 = vadd.f32 1.0, %v2095_v48 }
 0x1a2   :  { %2096 = vrcp.f32 %v850_v49 }
 0x1ac   :  { %v2097_v50 = vpop.eup %2096 }
 0x1ad   :  { %v854_v53 = vmul.f32 0.0, %v2097_v50 }
 0x210   :  { %v857_v51 = vpop.permute.xlu0 %856 }
 0x211   :  { %v859_v52 = vmul.f32 %v2097_v50, %v857_v51 }
 0x213   :  { %861 = vrot.lane.b32.xlu1 %v859_v52, %s2168_s6 }
 0x285   :  { %v862_v54 = vpop.permute.xlu1 %861 }
 0x286   :  { %v864_v55 = vadd.f32 %v862_v54, %v854_v53 }
 0x288   :  { %2098 = vtanh.f32 %v864_v55 }
 0x292   :  { %v2099_v56 = vpop.eup %2098 }
 0x293   :  { %867 = vrot.lane.b32.xlu0 %v2099_v56, %s2167_s1 }
 0x305   :  { %v868_v57 = vpop.permute.xlu0 %867 }
 0x306   :  { %v870_v58 = vmul.f32 %v2097_v50, %v868_v57 }
 0x308   :  { %872 = vrot.lane.b32.xlu1 %v870_v58, %s2168_s6 }
 0x37a   :  { %v873_v59 = vpop.permute.xlu1 %872 }
 0x37b   :  { %1910 = vmatmul.mubr.msk.f32.vlgmr.msra.gmra.mrb[2].mxu1 %vm772_vm5, %v873_v59 }
 0x37c   :  { %2013 = vmatpush3.bf16.msra.mxu1 %v2266_v17  ;;  %1920 = vmatprep.mubr.msk.f32.mxu1 %vm2164_vm1, %v2165_v22 }
 0x37d   :  { %2014 = vmatprep.subr.bf16.mxu1 %v2163_v18 }
 0x380   :  { %2016 = vmatpush3.bf16.msra.mxu1 %v2277_v21 }
 0x381   :  { %2017 = vmatprep.subr.bf16.mxu1 %v2163_v18 }
 0x44e   :  { %v942_v60 = vpop.f32.mrb[2].mxu1 }
 0x44f   :  { %v946_v61 = vadd.f32 %v942_v60, %v761_v30  ;;  %v1911_v62 = vpop.f32.mrb[3].mxu1 }
 0x451   :  { %2100 = vtanh.f32 %v946_v61  ;;  %v1731_v0 = vmul.f32 -1.442695, %v946_v61 }
 0x453   :  { %2102 = vpow2.f32 %v1731_v0 }
 0x45b   :  { %v2101_v63 = vpop.eup %2100 }
 0x45c   :  { %956 = vrot.lane.b32.xlu0 %v2101_v63, %s2167_s1 }
 0x45d   :  { %v2103_v1 = vpop.eup %2102 }
 0x45e   :  { %v950_v2 = vadd.f32 1.0, %v2103_v1 }
 0x460   :  { %2104 = vrcp.f32 %v950_v2 }
 0x46a   :  { %v2105_v3 = vpop.eup %2104 }
 0x46b   :  { %v954_v6 = vmul.f32 %v2105_v3, %v864_v55 }
 0x4ce   :  { %v957_v4 = vpop.permute.xlu0 %956 }
 0x4cf   :  { %v959_v5 = vmul.f32 %v2105_v3, %v957_v4 }
 0x4d1   :  { %961 = vrot.lane.b32.xlu1 %v959_v5, %s2168_s6 }
 0x543   :  { %v962_v7 = vpop.permute.xlu1 %961 }
 0x544   :  { %v964_v8 = vadd.f32 %v962_v7, %v954_v6 }
 0x546   :  { %2106 = vtanh.f32 %v964_v8 }
 0x550   :  { %v2107_v9 = vpop.eup %2106 }
 0x551   :  { %967 = vrot.lane.b32.xlu0 %v2107_v9, %s2167_s1 }
 0x5c3   :  { %v968_v10 = vpop.permute.xlu0 %967 }
 0x5c4   :  { %v970_v11 = vmul.f32 %v2105_v3, %v968_v10 }
 0x5c6   :  { %972 = vrot.lane.b32.xlu1 %v970_v11, %s2168_s6 }
 0x638   :  { %v973_v12 = vpop.permute.xlu1 %972 }
 0x639   :  { %1921 = vmatmul.mubr.msk.f32.vlgmr.msra.gmra.mrb[4].mxu1 %vm772_vm5, %v973_v12 }
 0x63a   :  { %2019 = vmatpush3.bf16.msra.mxu1 %v2266_v17  ;;  %1931 = vmatprep.mubr.msk.f32.mxu1 %vm2164_vm1, %v2165_v22 }
 0x63b   :  { %2020 = vmatprep.subr.bf16.mxu1 %v2163_v18 }
 0x63e   :  { %2022 = vmatpush3.bf16.msra.mxu1 %v2277_v21 }
 0x63f   :  { %2023 = vmatprep.subr.bf16.mxu1 %v2163_v18 }
 0x70c   :  { %v1042_v13 = vpop.f32.mrb[4].mxu1 }
 0x70d   :  { %v1046_v14 = vadd.f32 %v1042_v13, %v2424_v37  ;;  %v1922_v15 = vpop.f32.mrb[5].mxu1 }
 0x70f   :  { %2108 = vtanh.f32 %v1046_v14  ;;  %v1733_v19 = vmul.f32 -1.442695, %v1046_v14 }
 0x711   :  { %2110 = vpow2.f32 %v1733_v19 }
 0x719   :  { %v2109_v16 = vpop.eup %2108 }
 0x71a   :  { %1056 = vrot.lane.b32.xlu0 %v2109_v16, %s2167_s1 }
 0x71b   :  { %v2111_v20 = vpop.eup %2110 }
 0x71c   :  { %v1050_v23 = vadd.f32 1.0, %v2111_v20 }
 0x71e   :  { %2112 = vrcp.f32 %v1050_v23 }
 0x728   :  { %v2113_v24 = vpop.eup %2112 }
 0x729   :  { %v1054_v27 = vmul.f32 %v2113_v24, %v964_v8 }
 0x78c   :  { %v1057_v25 = vpop.permute.xlu0 %1056 }
 0x78d   :  { %v1059_v26 = vmul.f32 %v2113_v24, %v1057_v25 }
 0x78f   :  { %1061 = vrot.lane.b32.xlu1 %v1059_v26, %s2168_s6 }
 0x801   :  { %v1062_v28 = vpop.permute.xlu1 %1061 }
 0x802   :  { %v1064_v29 = vadd.f32 %v1062_v28, %v1054_v27 }
 0x804   :  { %2114 = vtanh.f32 %v1064_v29 }
 0x80e   :  { %v2115_v30 = vpop.eup %2114 }
 0x80f   :  { %1067 = vrot.lane.b32.xlu0 %v2115_v30, %s2167_s1 }
 0x881   :  { %v1068_v31 = vpop.permute.xlu0 %1067 }
 0x882   :  { %v1070_v32 = vmul.f32 %v2113_v24, %v1068_v31 }
 0x884   :  { %1072 = vrot.lane.b32.xlu1 %v1070_v32, %s2168_s6 }
 0x8f6   :  { %v1073_v33 = vpop.permute.xlu1 %1072 }
 0x8f7   :  { %1932 = vmatmul.mubr.msk.f32.vlgmr.msra.gmra.mrb[6].mxu1 %vm772_vm5, %v1073_v33 }
 0x8f8   :  { %2025 = vmatpush3.bf16.msra.mxu1 %v2266_v17  ;;  %1942 = vmatprep.mubr.msk.f32.mxu1 %vm2164_vm1, %v2165_v22 }
 0x8f9   :  { %2026 = vmatprep.subr.bf16.mxu1 %v2163_v18 }
 0x8fc   :  { %2028 = vmatpush3.bf16.msra.mxu1 %v2277_v21 }
 0x8fd   :  { %2029 = vmatprep.subr.bf16.mxu1 %v2163_v18 }
 0x9ca   :  { %v1142_v34 = vpop.f32.mrb[6].mxu1 }
 0x9cb   :  { %v1146_v36 = vadd.f32 %v1142_v34, %v2422_v35  ;;  %v1933_v37 = vpop.f32.mrb[7].mxu1 }
 0x9cd   :  { %2116 = vtanh.f32 %v1146_v36  ;;  %v1735_v40 = vmul.f32 -1.442695, %v1146_v36 }
 0x9cf   :  { %2118 = vpow2.f32 %v1735_v40 }
 0x9d7   :  { %v2117_v38 = vpop.eup %2116 }
 0x9d8   :  { %1156 = vrot.lane.b32.xlu0 %v2117_v38, %s2167_s1 }
 0x9d9   :  { %v2119_v42 = vpop.eup %2118 }
 0x9da   :  { %v1150_v44 = vadd.f32 1.0, %v2119_v42 }
 0x9dc   :  { %2120 = vrcp.f32 %v1150_v44 }
 0x9e6   :  { %v2121_v46 = vpop.eup %2120 }
 0x9e7   :  { %v1154_v49 = vmul.f32 %v2121_v46, %v1064_v29 }
 0xa4a   :  { %v1157_v47 = vpop.permute.xlu0 %1156 }
 0xa4b   :  { %v1159_v48 = vmul.f32 %v2121_v46, %v1157_v47 }
 0xa4d   :  { %1161 = vrot.lane.b32.xlu1 %v1159_v48, %s2168_s6 }
 0xabf   :  { %v1162_v50 = vpop.permute.xlu1 %1161 }
 0xac0   :  { %v1164_v51 = vadd.f32 %v1162_v50, %v1154_v49 }
 0xac2   :  { %2122 = vtanh.f32 %v1164_v51 }
 0xacc   :  { %v2123_v35 = vpop.eup %2122 }
 0xacd   :  { %1167 = vrot.lane.b32.xlu0 %v2123_v35, %s2167_s1 }
 0xb3f   :  { %v1168_v52 = vpop.permute.xlu0 %1167 }
 0xb40   :  { %v1170_v53 = vmul.f32 %v2121_v46, %v1168_v52 }
 0xb42   :  { %1172 = vrot.lane.b32.xlu1 %v1170_v53, %s2168_s6 }
 0xbb4   :  { %v1173_v54 = vpop.permute.xlu1 %1172 }
 0xbb5   :  { %1943 = vmatmul.mubr.msk.f32.vlgmr.msra.gmra.mrb[8].mxu1 %vm772_vm5, %v1173_v54 }
 0xbb6   :  { %2031 = vmatpush3.bf16.msra.mxu1 %v2266_v17  ;;  %1953 = vmatprep.mubr.msk.f32.mxu1 %vm2164_vm1, %v2165_v22 }
 0xbb7   :  { %2032 = vmatprep.subr.bf16.mxu1 %v2163_v18 }
 0xbba   :  { %2034 = vmatpush3.bf16.msra.mxu1 %v2277_v21 }
 0xbbb   :  { %2035 = vmatprep.subr.bf16.mxu1 %v2163_v18 }
 0xc88   :  { %v1242_v55 = vpop.f32.mrb[8].mxu1 }
 0xc89   :  { %v1246_v56 = vadd.f32 %v1242_v55, %v2428_v41  ;;  %v1944_v57 = vpop.f32.mrb[9].mxu1 }
 0xc8a   :  { %v1572_v57 = vld [vmem:[%s2542_s8 + $0x8] sm:$0xff] }
 0xc8b   :  { %2124 = vtanh.f32 %v1246_v56  ;;  %v1737_v59 = vmul.f32 -1.442695, %v1246_v56 }
 0xc8d   :  { %2126 = vpow2.f32 %v1737_v59 }
 0xc95   :  { %v2125_v58 = vpop.eup %2124 }
 0xc96   :  { %1256 = vrot.lane.b32.xlu0 %v2125_v58, %s2167_s1  ;;  %v1573_v58 = vld [vmem:[%s2542_s8 + $0x10] sm:$0xff] }
 0xc97   :  { %v2127_v60 = vpop.eup %2126 }
 0xc98   :  { %v1250_v61 = vadd.f32 1.0, %v2127_v60  ;;  %v1574_v60 = vld [vmem:[%s2542_s8 + $0x18] sm:$0xff] }
 0xc9a   :  { %2128 = vrcp.f32 %v1250_v61  ;;  %v2051_v61 = vpack.c.bf16 %v1574_v60, %v1573_v58 }
 0xca4   :  { %v2129_v62 = vpop.eup %2128 }
 0xca5   :  { %v1254_v1 = vmul.f32 %v2129_v62, %v1164_v51 }
 0xd08   :  { %v1257_v63 = vpop.permute.xlu0 %1256 }
 0xd09   :  { %v1259_v0 = vmul.f32 %v2129_v62, %v1257_v63  ;;  %v15_v63 = vstv %s2543_s9 }
 0xd0a   :  { %16 = vst [vmem:[#allocation2] sm:$0x1] %v15_v63 }
 0xd0b   :  { %1261 = vrot.lane.b32.xlu1 %v1259_v0, %s2168_s6 }
 0xd7d   :  { %v1262_v2 = vpop.permute.xlu1 %1261 }
 0xd7e   :  { %v1264_v3 = vadd.f32 %v1262_v2, %v1254_v1 }
 0xd80   :  { %2130 = vtanh.f32 %v1264_v3 }
 0xd8a   :  { %v2131_v41 = vpop.eup %2130 }
 0xd8b   :  { %1267 = vrot.lane.b32.xlu0 %v2131_v41, %s2167_s1 }
 0xdfd   :  { %v1268_v4 = vpop.permute.xlu0 %1267 }
 0xdfe   :  { %v1270_v5 = vmul.f32 %v2129_v62, %v1268_v4 }
 0xe00   :  { %1272 = vrot.lane.b32.xlu1 %v1270_v5, %s2168_s6 }
 0xe72   :  { %v1273_v6 = vpop.permute.xlu1 %1272 }
 0xe73   :  { %1954 = vmatmul.mubr.msk.f32.vlgmr.msra.gmra.mrb[10].mxu1 %vm772_vm5, %v1273_v6 }
 0xe74   :  { %2037 = vmatpush3.bf16.msra.mxu1 %v2266_v17  ;;  %1964 = vmatprep.mubr.msk.f32.mxu1 %vm2164_vm1, %v2165_v22 }
 0xe75   :  { %2038 = vmatprep.subr.bf16.mxu1 %v2163_v18 }
 0xe78   :  { %2040 = vmatpush3.bf16.msra.mxu1 %v2277_v21 }
 0xe79   :  { %2041 = vmatprep.subr.bf16.mxu1 %v2163_v18 }
 0xf46   :  { %v1342_v7 = vpop.f32.mrb[10].mxu1 }
 0xf47   :  { %v1346_v8 = vadd.f32 %v1342_v7, %v2426_v39  ;;  %v1955_v9 = vpop.f32.mrb[11].mxu1 }
 0xf49   :  { %2132 = vtanh.f32 %v1346_v8  ;;  %v1739_v11 = vmul.f32 -1.442695, %v1346_v8 }
 0xf4b   :  { %2134 = vpow2.f32 %v1739_v11 }
 0xf53   :  { %v2133_v10 = vpop.eup %2132 }
 0xf54   :  { %1356 = vrot.lane.b32.xlu0 %v2133_v10, %s2167_s1 }
 0xf55   :  { %v2135_v12 = vpop.eup %2134 }
 0xf56   :  { %v1350_v13 = vadd.f32 1.0, %v2135_v12 }
 0xf58   :  { %2136 = vrcp.f32 %v1350_v13 }
 0xf62   :  { %v2137_v14 = vpop.eup %2136 }
 0xf63   :  { %v1354_v19 = vmul.f32 %v2137_v14, %v1264_v3  ;;  %v1744_v3 = vld [vmem:[#allocation2] ss:$0 sm:$0xff] }
 0xfc6   :  { %v1357_v15 = vpop.permute.xlu0 %1356 }
 0xfc7   :  { %v1359_v16 = vmul.f32 %v2137_v14, %v1357_v15 }
 0xfc9   :  { %1361 = vrot.lane.b32.xlu1 %v1359_v16, %s2168_s6 }
0x103b   :  { %v1362_v20 = vpop.permute.xlu1 %1361 }
0x103c   :  { %v1364_v23 = vadd.f32 %v1362_v20, %v1354_v19 }
0x103e   :  { %2138 = vtanh.f32 %v1364_v23 }
0x1048   :  { %v2139_v39 = vpop.eup %2138 }
0x1049   :  { %1367 = vrot.lane.b32.xlu0 %v2139_v39, %s2167_s1 }
0x10bb   :  { %v1368_v24 = vpop.permute.xlu0 %1367 }
0x10bc   :  { %v1370_v25 = vmul.f32 %v2137_v14, %v1368_v24 }
0x10be   :  { %1372 = vrot.lane.b32.xlu1 %v1370_v25, %s2168_s6 }
0x1130   :  { %v1373_v26 = vpop.permute.xlu1 %1372 }
0x1131   :  { %1965 = vmatmul.mubr.msk.f32.vlgmr.msra.gmra.mrb[12].mxu1 %vm772_vm5, %v1373_v26 }
0x1132   :  { %2043 = vmatpush3.bf16.msra.mxu1 %v2266_v17  ;;  %1975 = vmatprep.mubr.msk.f32.mxu1 %vm2164_vm1, %v2165_v22  ;;  %vm1663_vm1 = vcmask 7168  }
0x1133   :  { %2044 = vmatprep.subr.bf16.mxu1 %v2163_v18 }
0x1136   :  { %2046 = vmatpush3.bf16.msra.mxu1 %v2277_v21 }
0x1204   :  { %v1442_v27 = vpop.f32.mrb[12].mxu1 }
0x1205   :  { %v1446_v28 = vadd.f32 %v1442_v27, %v2432_v45  ;;  %v1966_v29 = vpop.f32.mrb[13].mxu1 }
0x1207   :  { %2140 = vtanh.f32 %v1446_v28  ;;  %v1741_v31 = vmul.f32 -1.442695, %v1446_v28 }
0x1209   :  { %2142 = vpow2.f32 %v1741_v31 }
0x1211   :  { %v2141_v30 = vpop.eup %2140 }
0x1212   :  { %1456 = vrot.lane.b32.xlu0 %v2141_v30, %s2167_s1 }
0x1213   :  { %v2143_v32 = vpop.eup %2142 }
0x1214   :  { %v1450_v33 = vadd.f32 1.0, %v2143_v32 }
0x1216   :  { %2144 = vrcp.f32 %v1450_v33 }
0x1220   :  { %v2145_v17 = vpop.eup %2144 }
0x1221   :  { %v1454_v36 = vmul.f32 %v2145_v17, %v1364_v23 }
0x1284   :  { %v1457_v34 = vpop.permute.xlu0 %1456 }
0x1285   :  { %v1459_v22 = vmul.f32 %v2145_v17, %v1457_v34 }
0x1287   :  { %1461 = vrot.lane.b32.xlu1 %v1459_v22, %s2168_s6 }
0x12f9   :  { %v1462_v21 = vpop.permute.xlu1 %1461 }
0x12fa   :  { %v1464_v37 = vadd.f32 %v1462_v21, %v1454_v36 }
0x12fc   :  { %2146 = vtanh.f32 %v1464_v37 }
0x1306   :  { %v2147_v45 = vpop.eup %2146 }
0x1307   :  { %1467 = vrot.lane.b32.xlu0 %v2147_v45, %s2167_s1 }
0x1379   :  { %v1468_v38 = vpop.permute.xlu0 %1467 }
0x137a   :  { %v1470_v40 = vmul.f32 %v2145_v17, %v1468_v38 }
0x137c   :  { %1472 = vrot.lane.b32.xlu1 %v1470_v40, %s2168_s6 }
0x13ee   :  { %v1473_v42 = vpop.permute.xlu1 %1472 }
0x13ef   :  { %1976 = vmatmul.mubr.msk.f32.vlgmr.msra.gmra.mrb[14].mxu1 %vm772_vm5, %v1473_v42 }
0x14c2   :  { %v1542_v44 = vpop.f32.mrb[14].mxu1 }
0x14c3   :  { %v1546_v46 = vadd.f32 %v1542_v44, %v2430_v43  ;;  %v1977_v47 = vpop.f32.mrb[15].mxu1  ;;  %v1571_v43 = vld [vmem:[%s2542_s8] sm:$0xff] }
0x14c4   :  { %v2048_v59 = vpack.c.bf16 %v1572_v57, %v1571_v43 }
0x14c5   :  { %2148 = vtanh.f32 %v1546_v46  ;;  %v1743_v49 = vmul.f32 -1.442695, %v1546_v46 }
0x14c6   :  { %2049 = vmatpush3.bf16.msra.mxu0 %v2048_v59 }
0x14c7   :  { %2150 = vpow2.f32 %v1743_v49  ;;  %2050 = vmatprep.subr.bf16.mxu0 %v2163_v18 }
0x14ca   :  { %2052 = vmatpush3.bf16.msra.mxu0 %v2051_v61 }
0x14cf   :  { %v2149_v48 = vpop.eup %2148 }
0x14d0   :  { %1556 = vrot.lane.b32.xlu0 %v2149_v48, %s2167_s1 }
0x14d1   :  { %v2151_v50 = vpop.eup %2150 }
0x14d2   :  { %v1550_v51 = vadd.f32 1.0, %v2151_v50 }
0x14d4   :  { %2152 = vrcp.f32 %v1550_v51 }
0x14de   :  { %v2153_v35 = vpop.eup %2152 }
0x14df   :  { %v1554_v54 = vmul.f32 %v2153_v35, %v1464_v37 }
0x1542   :  { %v1557_v52 = vpop.permute.xlu0 %1556 }
0x1543   :  { %v1559_v53 = vmul.f32 %v2153_v35, %v1557_v52 }
0x1545   :  { %1561 = vrot.lane.b32.xlu1 %v1559_v53, %s2168_s6 }
0x15b7   :  { %v1562_v55 = vpop.permute.xlu1 %1561 }
0x15b8   :  { %v1564_v56 = vadd.f32 %v1562_v55, %v1554_v54 }
0x15ba   :  { %2154 = vtanh.f32 %v1564_v56 }
0x15c4   :  { %v2155_v62 = vpop.eup %2154 }
0x15c5   :  { %1567 = vrot.lane.b32.xlu0 %v2155_v62, %s2167_s1 }
0x1637   :  { %v1568_v0 = vpop.permute.xlu0 %1567 }
0x1638   :  { %v1570_v1 = vmul.f32 %v2153_v35, %v1568_v0 }
0x163a   :  { %1583 = vrot.lane.b32.xlu1 %v1570_v1, %s2168_s6 }
0x16ac   :  { %v1584_v2 = vpop.permute.xlu1 %1583 }
0x16ad   :  { %1987 = vmatmul.mubr.msk.f32.vlgmr.msra.gmra.mrb[8].mxu0 %vm772_vm5, %v1584_v2 }
0x1780   :  { %v1653_v41 = vpop.f32.mrb[8].mxu0 }
0x1781   :  { %v1654_v4 = vadd.f32 %v1744_v3, %v1653_v41  ;;  %v1988_v18 = vpop.f32.mrb[9].mxu0 }
0x1783   :  { %v1746_v5 = vmul.f32 -1.442695, %v1654_v4 }
0x1785   :  { %2156 = vpow2.f32 %v1746_v5 }
0x178f   :  { %v2157_v6 = vpop.eup %2156 }
0x1790   :  { %v1660_v7 = vadd.f32 1.0, %v2157_v6 }
0x1792   :  { %2158 = vrcp.f32 %v1660_v7 }
0x179c   :  { %v2159_v8 = vpop.eup %2158 }
0x179d   :  { %1664 = vst.msk [vmem:[%s2544_s10] sm:$0xff] %vm1663_vm1, %v2159_v8 }

</bundles_post_ra>
